<compile_context>
chip_gen: v7x
topology: tpu7x:2x2x1
jax: 0.10.0
libtpu: 0.0.40
codegen_flags: <defaults>
</compile_context>

<pallas_src>
import jax
import jax.numpy as jnp
from jax.experimental import pallas as pl
from jax.experimental.pallas import tpu as pltpu


def _round_up(x, m):
    return ((x + m - 1) // m) * m


def _tpu_defaults():
    """Generation-aware tile targets and VMEM scoped limit."""
    kind = ""
    try:
        kind = jax.devices()[0].device_kind.lower()
    except Exception:
        pass
    mib = 1024 * 1024
    if "v7" in kind:   # 64 MiB physical VMEM per TC, 2 TCs, 3.2 TB/s HBM
        return dict(vmem_limit=48 * mib, tm_target=512, tf_target=1024)
    if "v6" in kind:   # 128 MiB VMEM, needs ~650 flops/B => big row tiles
        return dict(vmem_limit=100 * mib, tm_target=1024, tf_target=2048)
    if "v5" in kind:   # 128 MiB VMEM, lower roofline (~240 flops/B)
        return dict(vmem_limit=96 * mib, tm_target=512, tf_target=1024)
    # Unknown generation: conservative settings that also fit v7x's VMEM.
    return dict(vmem_limit=48 * mib, tm_target=512, tf_target=1024)


def _pick_tiles(M, d_model, n_out, d_ff, dsize, cfg):
    """Pick (tm, tf) that fit the per-generation VMEM budget.

    tf is always a divisor of d_ff (lane-aligned, or d_ff itself) so the
    reduction grid axis never produces out-of-bounds blocks.
    """
    budget = int(cfg["vmem_limit"] * 0.75)  # headroom for compiler temps
    m_align = _round_up(M, 8)

    tf_cands = sorted(
        {t for t in range(128, d_ff, 128) if d_ff % t == 0} | {d_ff},
        reverse=True,
    )

    def vmem_bytes(tm, tf):
        x_t = 2 * tm * d_model * dsize          # double-buffered x tile
        w1_t = 2 * d_model * tf * dsize         # double-buffered W1 tile
        w2_t = 2 * tf * n_out * dsize           # double-buffered W2 tile
        b_t = 2 * (tf + n_out) * 4              # f32 biases
        out_t = 2 * tm * n_out * dsize          # double-buffered out tile
        acc = tm * n_out * 4                    # f32 accumulator scratch
        h_tmp = tm * tf * 4                     # f32 hidden tile (temp)
        return x_t + w1_t + w2_t + b_t + out_t + acc + h_tmp

    tm = min(cfg["tm_target"], m_align)
    # Keep >= 2 row tiles whenever possible so the "parallel" row axis can be
    # split across v7x's two TensorCores (near-free extra step elsewhere).
    if tm >= m_align and m_align >= 16:
        tm = max(8, _round_up(m_align // 2, 8))

    while True:
        fitting = [t for t in tf_cands if vmem_bytes(tm, t) <= budget]
        preferred = [t for t in fitting if t <= cfg["tf_target"]]
        if preferred:
            return tm, preferred[0]       # largest fitting tf <= target
        if fitting:
            return tm, fitting[-1]        # smallest fitting candidate
        if tm > 8:
            tm = max(8, _round_up(tm // 2, 8))
        else:
            return tm, tf_cands[-1]       # last resort: smallest expressible


def _ffn_kernel(x_ref, w1_ref, b1_ref, w2_ref, b2_ref, o_ref, acc_ref):
    # x_ref:  (tm, d_model)    w1_ref: (d_model, tf)   b1_ref: (1, tf)   f32
    # w2_ref: (tf, n_out)      b2_ref: (1, n_out) f32
    # o_ref:  (tm, n_out)      acc_ref: (tm, n_out) f32 scratch
    j = pl.program_id(1)

    @pl.when(j == 0)
    def _():
        acc_ref[...] = jnp.zeros_like(acc_ref)

    # h_tile = relu(x @ W1_tile + b1_tile)  -- MXU matmul, f32 accumulate.
    h = jnp.dot(x_ref[...], w1_ref[...], preferred_element_type=jnp.float32)
    h = jnp.maximum(h + b1_ref[...], 0.0)

    # Partial second matmul, accumulated over the d_ff reduction grid axis.
    acc_ref[...] += jnp.dot(
        h.astype(w2_ref.dtype), w2_ref[...], preferred_element_type=jnp.float32
    )

    @pl.when(j == pl.num_programs(1) - 1)
    def _():
        o_ref[...] = (acc_ref[...] + b2_ref[...]).astype(o_ref.dtype)


def position_wise_feed_forward(x, w1, b1, w2, b2, *, tm=None, tf=None,
                               compute_dtype=None):
    """x: [..., d_model]; w1: [d_model, d_ff]; b1: [d_ff]; w2: [d_ff, d_model]; b2: [d_model].

    compute_dtype: optional dtype (e.g. jnp.bfloat16) for the MXU operands;
    accumulation is always f32 and the output keeps x.dtype.  Default None
    keeps the incoming dtype (exact parity with the f32 PyTorch reference).
    """
    *lead, d_model = x.shape
    d_ff = w1.shape[1]
    assert w1.shape == (d_model, d_ff)
    assert b1.shape == (d_ff,)
    assert w2.shape == (d_ff, d_model)
    assert b2.shape == (d_model,)

    xf = x.reshape(-1, d_model)
    M = xf.shape[0]

    # Lane-dense output: pad the output feature dim to a multiple of 128 so the
    # out_spec stores full vregs instead of masked partial stores.
    N = d_model
    N_pad = _round_up(N, 128) if N % 128 else N

    w2p = w2 if N_pad == N else jnp.pad(w2, ((0, 0), (0, N_pad - N)))
    b1_f32 = b1.reshape(1, d_ff).astype(jnp.float32)
    b2_f32 = (b2 if N_pad == N else jnp.pad(b2, (0, N_pad - N)))
    b2_f32 = b2_f32.reshape(1, N_pad).astype(jnp.float32)

    w1p = w1
    if compute_dtype is not None:
        xf = xf.astype(compute_dtype)
        w1p = w1p.astype(compute_dtype)
        w2p = w2p.astype(compute_dtype)

    cfg = _tpu_defaults()
    dsize = jnp.dtype(xf.dtype).itemsize

    tm_sel, tf_sel = _pick_tiles(M, d_model, N_pad, d_ff, dsize, cfg)
    tm = tm_sel if tm is None else tm
    tf = tf_sel if tf is None else tf
    assert d_ff % tf == 0, "tf must divide d_ff"

    # Pad rows to a multiple of tm (pad rows are computed then discarded).
    M_pad = _round_up(M, tm)
    if M_pad != M:
        xf = jnp.pad(xf, ((0, M_pad - M), (0, 0)))

    grid = (M_pad // tm, d_ff // tf)

    out = pl.pallas_call(
        _ffn_kernel,
        out_shape=jax.ShapeDtypeStruct((M_pad, N_pad), x.dtype),
        grid_spec=pltpu.PrefetchScalarGridSpec(
            num_scalar_prefetch=0,
            grid=grid,
            in_specs=[
                pl.BlockSpec((tm, d_model), lambda i, j: (i, 0)),   # x row tile
                pl.BlockSpec((d_model, tf), lambda i, j: (0, j)),   # W1 column tile
                pl.BlockSpec((1, tf), lambda i, j: (0, j)),         # b1 tile (f32)
                pl.BlockSpec((tf, N_pad), lambda i, j: (j, 0)),     # W2 row tile
                pl.BlockSpec((1, N_pad), lambda i, j: (0, 0)),      # b2 (resident)
            ],
            out_specs=pl.BlockSpec((tm, N_pad), lambda i, j: (i, 0)),
            scratch_shapes=[pltpu.VMEM((tm, N_pad), jnp.float32)],
        ),
        compiler_params=pltpu.CompilerParams(
            dimension_semantics=("parallel", "arbitrary"),
            vmem_limit_bytes=cfg["vmem_limit"],
        ),
    )(xf, w1p, b1_f32, w2p, b2_f32)

    out = out[:M, :N]
    return out.reshape(*lead, d_model)


def _reference(x, w1, b1, w2, b2):
    h = jnp.maximum(x @ w1 + b1, 0.0)
    return h @ w2 + b2


if __name__ == "__main__":
    key = jax.random.PRNGKey(0)
    B, S, d_model, d_ff = 2, 8, 32, 64

    kx, k1, kb1, k2, kb2 = jax.random.split(key, 5)
    x = jax.random.normal(kx, (B, S, d_model), dtype=jnp.float32)
    w1 = jax.random.normal(k1, (d_model, d_ff), dtype=jnp.float32) / jnp.sqrt(d_model)
    b1 = 0.1 * jax.random.normal(kb1, (d_ff,), dtype=jnp.float32)
    w2 = jax.random.normal(k2, (d_ff, d_model), dtype=jnp.float32) / jnp.sqrt(d_ff)
    b2 = 0.1 * jax.random.normal(kb2, (d_model,), dtype=jnp.float32)

    out = position_wise_feed_forward(x, w1, b1, w2, b2)
    out = jax.block_until_ready(out)

    ref = _reference(x, w1, b1, w2, b2)
    assert out.shape == (B, S, d_model)
    assert jnp.allclose(out, ref, atol=1e-4, rtol=1e-4), "mismatch vs reference"

    print("KERNEL_OK")
</pallas_src>

<mosaic_0001>
module attributes {stable_mosaic.version = 11 : i64} {
  func.func @_ffn_kernel(%arg0: i32, %arg1: i32, %arg2: memref<8x32xf32, #tpu.memory_space<vmem>>, %arg3: memref<32x64xf32, #tpu.memory_space<vmem>>, %arg4: memref<1x64xf32, #tpu.memory_space<vmem>>, %arg5: memref<64x128xf32, #tpu.memory_space<vmem>>, %arg6: memref<1x128xf32, #tpu.memory_space<vmem>>, %arg7: memref<8x128xf32, #tpu.memory_space<vmem>>, %arg8: memref<8x128xf32, #tpu.memory_space<vmem>>) attributes {dimension_semantics = [#tpu.dimension_semantics<parallel>, #tpu.dimension_semantics<arbitrary>], iteration_bounds = array<i64: 2, 1>, scalar_prefetch = 0 : i64, scratch_operands = 1 : i64, tpu.core_type = #tpu.core_type<tc>, window_params = [{transform_indices = @transform_0, window_bounds = array<i64: 8, 32>}, {transform_indices = @transform_1, window_bounds = array<i64: 32, 64>}, {transform_indices = @transform_2, window_bounds = array<i64: 1, 64>}, {transform_indices = @transform_3, window_bounds = array<i64: 64, 128>}, {pipeline_mode = #tpu.pipeline_mode<synchronous>, transform_indices = @transform_4, window_bounds = array<i64: 1, 128>}, {transform_indices = @transform_5, window_bounds = array<i64: 8, 128>}]} {
    %c0_i32 = arith.constant 0 : i32
    %0 = arith.cmpi eq, %arg1, %c0_i32 : i32
    %1 = arith.extui %0 : i1 to i32
    %c0_i32_0 = arith.constant 0 : i32
    %2 = arith.cmpi ne, %1, %c0_i32_0 : i32
    scf.if %2 {
      %cst_16 = arith.constant 0.000000e+00 : f32
      %19 = vector.broadcast %cst_16 : f32 to vector<8x128xf32>
      %c0_17 = arith.constant 0 : index
      %c0_18 = arith.constant 0 : index
      %20 = vector.load %arg8[%c0_17, %c0_18] : memref<8x128xf32, #tpu.memory_space<vmem>>, vector<8x128xf32>
      tpu.vector_store %arg8[%c0_17, %c0_18], %19 {strides = array<i32>} : memref<8x128xf32, #tpu.memory_space<vmem>>, vector<8x128xf32>,
    } else {
    }
    %c0 = arith.constant 0 : index
    %c0_1 = arith.constant 0 : index
    %3 = vector.load %arg2[%c0, %c0_1] : memref<8x32xf32, #tpu.memory_space<vmem>>, vector<8x32xf32>
    %c0_2 = arith.constant 0 : index
    %c0_3 = arith.constant 0 : index
    %4 = vector.load %arg3[%c0_2, %c0_3] : memref<32x64xf32, #tpu.memory_space<vmem>>, vector<32x64xf32>
    %cst = arith.constant dense<0.000000e+00> : vector<8x64xf32>
    %5 = tpu.matmul %3, %4, %cst {dimension_numbers = #tpu.dot_dimension_numbers<[1], [0], [0], [1], [0, 0, 1, 1], [], []>} : vector<8x32xf32>, vector<32x64xf32>, vector<8x64xf32> -> vector<8x64xf32>
    %c0_4 = arith.constant 0 : index
    %c0_5 = arith.constant 0 : index
    %6 = vector.load %arg4[%c0_4, %c0_5] : memref<1x64xf32, #tpu.memory_space<vmem>>, vector<1x64xf32>
    %7 = vector.broadcast %6 : vector<1x64xf32> to vector<8x64xf32>
    %8 = arith.addf %5, %7 : vector<8x64xf32>
    %cst_6 = arith.constant 0.000000e+00 : f32
    %9 = vector.broadcast %cst_6 : f32 to vector<8x64xf32>
    %10 = arith.maximumf %8, %9 : vector<8x64xf32>
    %c0_7 = arith.constant 0 : index
    %c0_8 = arith.constant 0 : index
    %11 = vector.load %arg8[%c0_7, %c0_8] : memref<8x128xf32, #tpu.memory_space<vmem>>, vector<8x128xf32>
    %c0_9 = arith.constant 0 : index
    %c0_10 = arith.constant 0 : index
    %12 = vector.load %arg5[%c0_9, %c0_10] : memref<64x128xf32, #tpu.memory_space<vmem>>, vector<64x128xf32>
    %cst_11 = arith.constant dense<0.000000e+00> : vector<8x128xf32>
    %13 = tpu.matmul %10, %12, %cst_11 {dimension_numbers = #tpu.dot_dimension_numbers<[1], [0], [0], [1], [0, 0, 1, 1], [], []>} : vector<8x64xf32>, vector<64x128xf32>, vector<8x128xf32> -> vector<8x128xf32>
    %14 = arith.addf %11, %13 : vector<8x128xf32>
    %c0_12 = arith.constant 0 : index
    %c0_13 = arith.constant 0 : index
    %15 = vector.load %arg8[%c0_12, %c0_13] : memref<8x128xf32, #tpu.memory_space<vmem>>, vector<8x128xf32>
    tpu.vector_store %arg8[%c0_12, %c0_13], %14 {strides = array<i32>} : memref<8x128xf32, #tpu.memory_space<vmem>>, vector<8x128xf32>,
    %c0_i32_14 = arith.constant 0 : i32
    %16 = arith.cmpi eq, %arg1, %c0_i32_14 : i32
    %17 = arith.extui %16 : i1 to i32
    %c0_i32_15 = arith.constant 0 : i32
    %18 = arith.cmpi ne, %17, %c0_i32_15 : i32
    scf.if %18 {
      %c0_16 = arith.constant 0 : index
      %c0_17 = arith.constant 0 : index
      %19 = vector.load %arg8[%c0_16, %c0_17] : memref<8x128xf32, #tpu.memory_space<vmem>>, vector<8x128xf32>
      %c0_18 = arith.constant 0 : index
      %c0_19 = arith.constant 0 : index
      %20 = vector.load %arg6[%c0_18, %c0_19] : memref<1x128xf32, #tpu.memory_space<vmem>>, vector<1x128xf32>
      %21 = vector.broadcast %20 : vector<1x128xf32> to vector<8x128xf32>
      %22 = arith.addf %19, %21 : vector<8x128xf32>
      %c0_20 = arith.constant 0 : index
      %c0_21 = arith.constant 0 : index
      %23 = vector.load %arg7[%c0_20, %c0_21] : memref<8x128xf32, #tpu.memory_space<vmem>>, vector<8x128xf32>
      tpu.vector_store %arg7[%c0_20, %c0_21], %22 {strides = array<i32>} : memref<8x128xf32, #tpu.memory_space<vmem>>, vector<8x128xf32>,
    } else {
    }
    return
  }
  func.func @transform_0(%arg0: i32, %arg1: i32) -> (i32, i32) {
    %c0_i32 = arith.constant 0 : i32
    %c0_i32_0 = arith.constant 0 : i32
    return %arg0, %c0_i32 : i32, i32
  }
  func.func @transform_1(%arg0: i32, %arg1: i32) -> (i32, i32) {
    %c0_i32 = arith.constant 0 : i32
    %c0_i32_0 = arith.constant 0 : i32
    return %c0_i32, %arg1 : i32, i32
  }
  func.func @transform_2(%arg0: i32, %arg1: i32) -> (i32, i32) {
    %c0_i32 = arith.constant 0 : i32
    %c0_i32_0 = arith.constant 0 : i32
    return %c0_i32, %arg1 : i32, i32
  }
  func.func @transform_3(%arg0: i32, %arg1: i32) -> (i32, i32) {
    %c0_i32 = arith.constant 0 : i32
    %c0_i32_0 = arith.constant 0 : i32
    return %arg1, %c0_i32 : i32, i32
  }
  func.func @transform_4(%arg0: i32, %arg1: i32) -> (i32, i32) {
    %c0_i32 = arith.constant 0 : i32
    %c0_i32_0 = arith.constant 0 : i32
    %c0_i32_1 = arith.constant 0 : i32
    return %c0_i32, %c0_i32_0 : i32, i32
  }
  func.func @transform_5(%arg0: i32, %arg1: i32) -> (i32, i32) {
    %c0_i32 = arith.constant 0 : i32
    %c0_i32_0 = arith.constant 0 : i32
    return %arg0, %c0_i32 : i32, i32
  }
}

</mosaic_0001>

<bundles_post_ra>
// kernel: tpu_custom_call.1
= control target key start
LH: loop header
LB: loop body
LE: loop exit
PB: predicated region body
PF: predicated region fallthrough
CT: control target
= control target key end

     0   :  { %10 = vsyncpa [#allocation4], 0  ;;  %s1276_s0 = inlined_call_operand.hbm [shape: f32[16,32], index: 0, kind: input, shape index: {}]   ;;  %s1277_s1 = inlined_call_operand.hbm [shape: f32[32,64], index: 1, kind: input, shape index: {}]   ;;  %s1278_s2 = inlined_call_operand.vmem [shape: f32[1,64], index: 2, kind: input, shape index: {}]   ;;  %s1279_s3 = inlined_call_operand.hbm [shape: f32[64,128], index: 3, kind: input, shape index: {}]   ;;  %s1280_s4 = inlined_call_operand.vmem [shape: f32[1,128], index: 4, kind: input, shape index: {}]   ;;  %s1281_s5 = inlined_call_operand.hbm [shape: f32[16,128], index: 5, kind: output, shape index: {}]  }
   0x1   :  { %12 = vsyncpa [#allocation4 + $0x1], 0 }
   0x2   :  { %13 = vsyncpa [#allocation7], 0 }
   0x3   :  { %14 = vsyncpa [#allocation5], 0 }
   0x4   :  { %16 = vsyncpa [#allocation5 + $0x1], 0  ;;  %s1013_s18 = smov 0   ;;  %s1015_s19 = smov 0  }
   0x5   :  { %s1017_s20 = smov 0   ;;  %s1019_s21 = smov 0  }
   0x6   :  { %s1021_s22 = smov 0   ;;  %s1023_s23 = smov 0  }
   0x7 LB: > { %s628_s24 = sadd.s32 4294967295, %s972_s23   ;;  %s629_s25 = sadd.s32 4294967294, %s972_s23   ;;  %s972_s23 = sphi %s1023_s23, %s22_s23   ;;  %s968_s22 = sphi %s1021_s22, %s1303_s22   ;;  %s964_s21 = sphi %s1019_s21, %s1302_s21   ;;  %s960_s20 = sphi %s1017_s20, %s1301_s20   ;;  %s956_s19 = sphi %s1015_s19, %s1300_s19   ;;  %s952_s18 = sphi %s1013_s18, %s1299_s18  }
   0x8   : > { %p54_p0 = scmp.ne.s32.totalorder %s956_s19, %s952_s18  ;;  %p1047_p1 = scmp.eq.s32.totalorder %s628_s24, 0 }
   0x9   : > { %p1051_p2 = scmp.eq.s32.totalorder %s628_s24, 1  ;;  %p183_p3 = scmp.eq.s32.totalorder %s629_s25, 1 }
   0xa   : > { %s1286_s26 = scalar_select %p1047_p1, 1, 0 }
   0xb   : > { %p1057_p4 = por %p1047_p1, %p54_p0  ;;  %p630_p5 = scmp.ge.s32.totalorder %s972_s23, 1 }
   0xc   : > { %p1062_p6 = por %p183_p3, %p54_p0  ;;  %p190_p7 = scmp.lt.s32.totalorder %s972_s23, 3 }
   0xd   : > { %s1288_s28 = scalar_select %p1057_p4, 1, 0 }
   0xe   : > { %s1289_s29 = scalar_select %p1062_p6, 1, 0 }
   0xf   : > { %p1067_p8 = pnand %p630_p5, %p190_p7  ;;  %s974_s6 = smov [#allocation6]  }
  0x10   : > { %s204_s7 = sshll.u32 %s974_s6, 4  ;;  %s975_s9 = smov [#allocation8]   ;;  %s1071_s7 = int_to_ptr.vmem [resolvable:$true] %s204_s7 }
  0x11   : > { %p724_p9 = pneg %p1067_p8  ;;  %s226_s10 = sshll.u32 %s975_s9, 4  ;;  %s1082_s10 = int_to_ptr.vmem [resolvable:$true] %s226_s10 }
  0x12   : > { %s800_s13 = scalar_lea.hbm %s1277_s1, 512 }
  0x13   : > { %p1078_p11 = pnand %p724_p9, %p1047_p1  ;;  %p801_p12 = scmp.ne.s32.totalorder %s1277_s1, %s800_s13 }
  0x14   : > { %p807_p5 = scmp.lt.u32.totalorder %s800_s13, %s1277_s1 }
  0x15   : > { %p802_p13 = pneg %p1078_p11 }
  0x17   : > { %p803_p0 = pnand %p802_p13, %p801_p12 }
  0x19   : > { %p804_p3 = pneg %p803_p0 }
  0x1b   : > { %p809_p7 = pnand %p807_p5, %p804_p3 }
  0x1d   : > { %812 = shalt.err (!%p809_p7)
}
  0x1e   : > { %s813_s24 = scalar_lea.vmem %s1071_s7, 512  ;;  %p821_p1 = scmp.lt.s32.totalorder %s1071_s7, %s1071_s7 }
  0x1f   : > { %p814_p9 = scmp.ne.s32.totalorder %s1071_s7, %s813_s24  ;;  %p822_p12 = scmp.lt.s32.totalorder %s813_s24, %s813_s24 }
  0x21   : > { %p816_p10 = pnand %p814_p9, %p802_p13  ;;  %p823_p0 = por %p822_p12, %p821_p1 }
  0x23   : > { %p817_p6 = pneg %p816_p10 }
  0x25   : > { %p824_p4 = pnand %p823_p0, %p817_p6 }
  0x27   : > { %827 = shalt.err (!%p824_p4)
}
  0x28   : > { %s976_s25 = smov 128   ;;  %s977_s6 = smov 8  }
  0x29   : > { %727 = dma.hbm_to_vmem [thread:$0]  (!%p1078_p11), %s1277_s1, 512, %s1071_s7, [#allocation7], %s976_s25, %s976_s25, %s977_s6  }
  0x2a   : > { %s828_s14 = scalar_lea.hbm %s1279_s3, 1024 }
  0x2b   : > { %p829_p1 = scmp.ne.s32.totalorder %s1279_s3, %s828_s14  ;;  %p835_p10 = scmp.lt.u32.totalorder %s828_s14, %s1279_s3 }
  0x2d   : > { %p831_p4 = pnand %p829_p1, %p802_p13 }
  0x2f   : > { %p832_p6 = pneg %p831_p4 }
  0x31   : > { %p837_p3 = pnand %p835_p10, %p832_p6 }
  0x33   : > { %840 = shalt.err (!%p837_p3)
}
  0x34   : > { %s841_s7 = scalar_lea.vmem %s1082_s10, 1024  ;;  %p849_p12 = scmp.lt.s32.totalorder %s1082_s10, %s1082_s10 }
  0x35   : > { %p842_p5 = scmp.ne.s32.totalorder %s1082_s10, %s841_s7  ;;  %p850_p0 = scmp.lt.s32.totalorder %s841_s7, %s841_s7 }
  0x37   : > { %p844_p7 = pnand %p842_p5, %p802_p13  ;;  %p851_p1 = por %p850_p0, %p849_p12 }
  0x39   : > { %p845_p9 = pneg %p844_p7 }
  0x3b   : > { %p852_p4 = pnand %p851_p1, %p845_p9 }
  0x3d   : > { %855 = shalt.err (!%p852_p4)
}
  0x3e   : > { %730 = dma.hbm_to_vmem [thread:$0]  (!%p1078_p11), %s1279_s3, 1024, %s1082_s10, [#allocation7], %s976_s25, %s976_s25, %s977_s6  }
  0x3f   : > { %s34_s12 = sadd.s32 1, %s968_s22  ;;  %s41_s13 = sadd.s32 1, %s960_s20 }
  0x40   : > { %p36_p13 = scmp.ge.s32.totalorder %s34_s12, 2  ;;  %p48_p6 = scmp.ne.s32.totalorder %s960_s20, %s956_s19 }
  0x41   : > { %p49_p10 = scmp.eq.s32.totalorder %s972_s23, 0  ;;  %p741_p3 = scmp.lt.s32.totalorder %s972_s23, 2 }
  0x42   : > { %s1305_s12 = smov (%p36_p13, %s34_s12), 0  ;;  %p1146_p7 = por %p1051_p2, %p48_p6 }
  0x43   : > { %p50_p5 = por %p49_p10, %p48_p6  ;;  %s38_s14 = ssub.s32 %s968_s22, %s1305_s12 }
  0x44   : > { %s1292_s8 = scalar_select %p1146_p7, 1, 0 }
  0x45   : > { %s243_s15 = sand.u32 1, %s960_s20   ;;  %p39_p9 = scmp.eq.s32.totalorder %s38_s14, 0 }
  0x46   : > { %s635_s10 = sshll.u32 %s243_s15, 3  ;;  %s636_s25 = sshll.u32 %s968_s22, 7 }
  0x47   : > { %s1155_s6 = scalar_select %p39_p9, %s960_s20, %s41_s13  }
  0x48   : > { %s1160_s24 = scalar_lea.hbm %s1276_s0, %s636_s25  ;;  %s247_s27 = scalar_lea.vmem [#allocation3], %s635_s10 }
  0x49   : > { %s254_s7 = sshll.u32 %s247_s27, 4  ;;  %p1164_p2 = pnand %p741_p3, %p50_p5  ;;  %s1168_s7 = int_to_ptr.vmem [resolvable:$true] %s254_s7 }
  0x4a   : > { %s244_s11 = scalar_lea.sflag [#allocation4], %s243_s15  ;;  %s856_s13 = scalar_lea.hbm %s1160_s24, 128 }
  0x4b   : > { %p857_p11 = scmp.ne.s32.totalorder %s1160_s24, %s856_s13  ;;  %p858_p12 = pneg %p1164_p2 }
  0x4c   : > { %s861_s25 = scalar_lea.hbm %s1276_s0, 256  ;;  %p862_p4 = scmp.lt.u32.totalorder %s1160_s24, %s1276_s0 }
  0x4d   : > { %p859_p0 = pnand %p858_p12, %p857_p11  ;;  %p863_p13 = scmp.lt.u32.totalorder %s861_s25, %s856_s13 }
  0x4e   : > { %p865_p10 = scmp.lt.u32.totalorder %s856_s13, %s1160_s24 }
  0x4f   : > { %p860_p1 = pneg %p859_p0  ;;  %p864_p6 = por %p863_p13, %p862_p4 }
  0x51   : > { %p866_p3 = por %p865_p10, %p864_p6 }
  0x53   : > { %p867_p5 = pnand %p866_p3, %p860_p1 }
  0x55   : > { %870 = shalt.err (!%p867_p5)
}
  0x56   : > { %s871_s15 = scalar_lea.vmem %s1168_s7, 128  ;;  %s978_s27 = smov [#allocation3]  }
  0x57   : > { %p872_p9 = scmp.ne.s32.totalorder %s1168_s7, %s871_s15  ;;  %s876_s14 = sshll.u32 %s978_s27, 4  ;;  %s877_s14 = int_to_ptr.vmem [resolvable:$false] %s876_s14 }
  0x58   : > { %s878_s10 = scalar_lea.vmem %s877_s14, 256  ;;  %p879_p7 = scmp.lt.s32.totalorder %s1168_s7, %s877_s14 }
  0x59   : > { %p874_p11 = pnand %p872_p9, %p858_p12  ;;  %p880_p4 = scmp.lt.s32.totalorder %s878_s10, %s871_s15 }
  0x5b   : > { %p875_p0 = pneg %p874_p11  ;;  %p881_p13 = por %p880_p4, %p879_p7 }
  0x5d   : > { %p882_p6 = pnand %p881_p13, %p875_p0 }
  0x5f   : > { %885 = shalt.err (!%p882_p6)
}
  0x60   : > { %734 = dma.hbm_to_vmem [thread:$0]  (!%p1164_p2), %s1160_s24, 128, %s1168_s7, %s244_s11  }
  0x61   : > { %263 = sbr.rel (%p1067_p8) target bundleno = 563 (0x233), region = 40  ;;  %s1198_s13 = sand.u32 (!%p1067_p8), 1, %s956_s19  }
  0x62   : > { %s638_s25 = sshll.u32 (!%p1067_p8), %s1198_s13, 3  ;;  %s266_s16 = scalar_lea.sflag (!%p1067_p8), [#allocation4], %s1198_s13 }
  0x63   : > { %s1204_s17 = scalar_lea.vmem (!%p1067_p8), [#allocation3], %s638_s25  ;;  %p1294_p7 = scmp.ne.s32.totalorder (!%p1067_p8), %s1288_s28, 0 }
  0x68   : > { %939 = dma.done.wait (%p1294_p7), %s266_s16, 128  }
  0x69   : > { %941 = vsyncadd (%p1294_p7), %s266_s16, 4294967168  ;;  %p1295_p2 = scmp.ne.s32.totalorder %s1286_s26, 0 }
  0x6b   : > { %943 = dma.done.wait (%p1295_p2), [#allocation7], 1536  }
  0x6c   : > { %945 = vsyncadd (%p1295_p2), [#allocation7], 4294965760  ;;  %v979_v0 = vmov 0.0|0.0   ;;  %vm980_vm0 = vmmov 0   ;;  %v981_v1 = vmov 0.0   ;;  %v317_v2 = vld [vmem:[#allocation6] sm:$0xff] }
  0x6d   : > { %694 = vmatprep.subr.bf16.mxu0 %v979_v0  ;;  %672 = vmatprep.mubr.msk.f32.mxu0 %vm980_vm0, %v981_v1  ;;  %v318_v3 = vld [vmem:[#allocation6 + $0x8] sm:$0xff]  ;;  %v319_v4 = vld [vmem:[#allocation6 + $0x10] sm:$0xff]  ;;  %v320_v6 = vld [vmem:[#allocation6 + $0x18] sm:$0xff]  ;;  %vm328_vm1 = vcmask 261120   ;;  %vm412_vm2 = vcmask 523264   ;;  %s647_s7 = sshll.u32 %s964_s21, 7 }
  0x6e   : > { %700 = vmatprep.subr.bf16.mxu1 %v979_v0  ;;  %691 = vmatprep.mubr.msk.f32.mxu1 %vm980_vm0, %v981_v1  ;;  %v695_v5 = vpack.c.bf16 %v318_v3, %v317_v2  ;;  %v404_v7 = vld [vmem:[#allocation8] sm:$0xff]  ;;  %v405_v8 = vld [vmem:[#allocation8 + $0x8] sm:$0xff]  ;;  %v406_v9 = vld [vmem:[#allocation8 + $0x10] sm:$0xff]  ;;  %v698_v11 = vpack.c.bf16 %v320_v6, %v319_v4  ;;  %s306_s9 = scalar_lea.vmem [#allocation9], %s638_s25  ;;  %s1227_s14 = scalar_lea.hbm %s1281_s5, %s647_s7 }
  0x6f   : > { %v407_v10 = vld [vmem:[#allocation8 + $0x18] sm:$0xff]  ;;  %v701_v12 = vpack.c.bf16 %v405_v8, %v404_v7  ;;  %v408_v14 = vld [vmem:[#allocation8 + $0x20] sm:$0xff]  ;;  %v409_v15 = vld [vmem:[#allocation8 + $0x28] sm:$0xff]  ;;  %s515_s11 = sshll.u32 %s306_s9, 4  ;;  %s502_s10 = scalar_lea.sflag [#allocation5], %s1198_s13  ;;  %s1229_s11 = int_to_ptr.vmem [resolvable:$true] %s515_s11 }
  0x70   : > { %696 = vmatpush3.bf16.msra.mxu0 %v695_v5  ;;  %v704_v13 = vpack.c.bf16 %v407_v10, %v406_v9  ;;  %v316_v16 = vld [vmem:[%s1204_s17] sm:$0xff]  ;;  %v707_v17 = vpack.c.bf16 %v409_v15, %v408_v14  ;;  %s886_s16 = scalar_lea.vmem %s1229_s11, 128  ;;  %p1296_p12 = scmp.ne.s32.totalorder %s1292_s8, 0 }
  0x71   : > { %697 = vmatprep.subr.bf16.mxu0 %v979_v0  ;;  %702 = vmatpush3.bf16.msra.mxu1 %v701_v12  ;;  %v410_v18 = vld [vmem:[#allocation8 + $0x30] sm:$0xff]  ;;  %v411_v19 = vld [vmem:[#allocation8 + $0x38] sm:$0xff]  ;;  %p887_p8 = scmp.ne.s32.totalorder %s1229_s11, %s886_s16  ;;  %s982_s21 = smov [#allocation9]  }
  0x72   : > { %703 = vmatprep.subr.bf16.mxu1 %v979_v0  ;;  %v710_v20 = vpack.c.bf16 %v411_v19, %v410_v18  ;;  %v642_v21 = vld [vmem:[%s1278_s2] ss:$0 sm:$0xff]  ;;  %s890_s25 = sshll.u32 %s982_s21, 4  ;;  %s891_s25 = int_to_ptr.vmem [resolvable:$false] %s890_s25 }
  0x73   : > { %v645_v26 = vld [vmem:[%s1280_s4] ss:$0 sm:$0xff]  ;;  %p888_p1 = pnand %p887_p8, %p1296_p12  ;;  %s892_s17 = scalar_lea.vmem %s891_s25, 256 }
  0x74   : > { %699 = vmatpush3.bf16.msra.mxu0 %v698_v11  ;;  %p893_p3 = scmp.lt.s32.totalorder %s1229_s11, %s891_s25  ;;  %p894_p5 = scmp.lt.s32.totalorder %s892_s17, %s886_s16 }
  0x75   : > { %705 = vmatpush3.bf16.msra.mxu1 %v704_v13  ;;  %p889_p10 = pneg %p888_p1 }
  0x76   : > { %706 = vmatprep.subr.bf16.mxu1 %v979_v0  ;;  %p895_p9 = por %p894_p5, %p893_p3 }
  0x77   : > { %673 = vmatmul.mubr.msk.f32.vlgmr.msra.gmra.mrb[0].mxu0 %vm328_vm1, %v316_v16 }
  0x78   : > { %p896_p11 = pnand %p895_p9, %p889_p10 }
  0x79   : > { %708 = vmatpush3.bf16.msra.mxu1 %v707_v17 }
  0x7a   : > { %709 = vmatprep.subr.bf16.mxu1 %v979_v0 }
  0x7d   : > { %711 = vmatpush3.bf16.msra.mxu1 %v710_v20 }
 0x14a   : > { %v398_v22 = vpop.f32.mrb[0].mxu0 }
 0x14b   : > { %v399_v23 = vadd.f32 %v642_v21, %v398_v22  ;;  %v674_v24 = vpop.f32.mrb[1].mxu0 }
 0x14d   : > { %v402_v25 = vmax.f32 %v399_v23, 0.0 }
 0x14f   : > { %692 = vmatmul.mubr.msk.f32.vlgmr.msra.gmra.mrb[0].mxu1 %vm412_vm2, %v402_v25 }
 0x222   : > { %v482_v27 = vpop.f32.mrb[0].mxu1 }
 0x223   : > { %v499_v28 = vadd.f32 %v645_v26, %v482_v27  ;;  %v693_v29 = vpop.f32.mrb[1].mxu1 }
 0x225   : > { %500 = vst [vmem:[%s306_s9] sm:$0xff] %v499_v28 }
 0x226   : > { %899 = shalt.err (!%p896_p11)
}
 0x227   : > { %s900_s13 = scalar_lea.hbm %s1227_s14, 128  ;;  %s904_s30 = scalar_lea.hbm %s1281_s5, 256 }
 0x228   : > { %p901_p0 = scmp.ne.s32.totalorder %s1227_s14, %s900_s13  ;;  %p905_p6 = scmp.lt.u32.totalorder %s1227_s14, %s1281_s5 }
 0x229   : > { %p906_p7 = scmp.lt.u32.totalorder %s904_s30, %s900_s13  ;;  %p908_p8 = scmp.lt.u32.totalorder %s900_s13, %s1227_s14 }
 0x22a   : > { %p902_p4 = pnand %p901_p0, %p1296_p12 }
 0x22b   : > { %p907_p2 = por %p906_p7, %p905_p6 }
 0x22c   : > { %p903_p13 = pneg %p902_p4 }
 0x22d   : > { %p909_p1 = por %p908_p8, %p907_p2 }
 0x22f   : > { %p910_p10 = pnand %p909_p1, %p903_p13 }
 0x231   : > { %913 = shalt.err (!%p910_p10)
}
 0x232   : > { %722 = dma.vmem_to_hbm [thread:$0]  (%p1296_p12), %s1229_s11, 128, %s1227_s14, %s502_s10  }
 0x233 PF: > { %s527_s9 = sand.u32 1, %s952_s18   ;;  %p1297_p3 = scmp.ne.s32.totalorder %s1289_s29, 0 }
 0x234   : > { %p1298_p5 = scmp.ge.s32.totalorder %s972_s23, 2  ;;  %s528_s15 = scalar_lea.sflag [#allocation5], %s527_s9 }
 0x236   : > { %p736_p9 = pnand %p1298_p5, %p1297_p3 }
 0x238   : > { %947 = dma.done.wait (!%p736_p9), %s528_s15, 128  }
 0x239   : > { %949 = vsyncadd (!%p736_p9), %s528_s15, 4294967168  ;;  %s22_s23 = sadd.s32 1, %s972_s23   ;;  %s1299_s18 = smov %s956_s19 }
 0x23a   : > { %p19_p11 = scmp.ge.s32.totalorder %s22_s23, 4   ;;  %s1300_s19 = smov %s960_s20 }
 0x23b   : > { %s1301_s20 = smov %s1155_s6  ;;  %s1302_s21 = smov %s968_s22 }
 0x23c   : > { %s1303_s22 = smov %s1305_s12  ;;  %21 = sbr.rel (!%p19_p11) target bundleno = 7 (0x7), region = 106 }
 0x243   :  { %533 = vsyncpa [#allocation4], 1 }
 0x244   :  { %535 = vsyncpa [#allocation4 + $0x1], 1 }
 0x245   :  { %536 = vsyncpa [#allocation7], 1 }
 0x246   :  { %537 = vsyncpa [#allocation5], 1 }
 0x247   :  { %539 = vsyncpa [#allocation5 + $0x1], 1 }

</bundles_post_ra>
